<compile_context>
chip_gen: v6e
topology: v6e:2x2x1
jax: 0.10.0
libtpu: 0.0.40
codegen_flags: <defaults>
</compile_context>

<pallas_src>
import jax
import jax.numpy as jnp
from jax.experimental import pallas as pl
from jax.experimental.pallas import tpu as pltpu


def _round_up(x, m):
    return ((x + m - 1) // m) * m


def _linear_kernel(x_ref, w_ref, b_ref, o_ref):
    # x_ref: (TB, K_pad)   w_ref: (K_pad, TN) (pre-transposed in wrapper)
    # b_ref: (1, TN) f32   o_ref: (TB, TN)
    acc = jnp.dot(x_ref[...], w_ref[...], preferred_element_type=jnp.float32)
    o_ref[...] = (acc + b_ref[...]).astype(o_ref.dtype)


def logistic_regression_forward(
    x,
    weight,
    bias,
    *,
    compute_dtype=None,            # e.g. jnp.bfloat16 (wins on v5e/v6e/v7x); None = f32 parity
    target_x_tile_bytes=2 << 20,   # ~2 MiB x tile -> near HBM roofline at modest VMEM
    max_block_b=4096,
    block_n=512,                   # lane tile for the out_dim axis (multiple of 128)
    x_buffers=2,                   # >2 -> pl.Buffered(x_buffers) on the x stream
    core_parallel=False,           # v7x: shard batch tiles across both TensorCores
    force_pallas=False,
):
    """y = x @ weight.T + bias, matching torch.nn.Linear (PyTorch (out_dim, in_dim) weight)."""
    B, in_dim = x.shape
    out_dim, in_dim_w = weight.shape
    assert in_dim == in_dim_w, "weight/in_dim mismatch"
    out_dtype = x.dtype

    # Tiny problems: one grid step of kernel launch is pure overhead vs a fused XLA dot.
    if not force_pallas and B * in_dim < 64 * 1024:
        return (x @ weight.T + bias).astype(out_dtype)

    if compute_dtype is not None:
        # bf16 operands halve streamed HBM bytes on every generation; accumulation stays f32.
        # (Ideally store params in bf16 across calls; a standalone cast of x is an extra HBM pass.)
        x = x.astype(compute_dtype)
        weight = weight.astype(compute_dtype)

    # ---- Lane / contraction padding (numerically exact: zero rows & cols) ------------------
    k_pad = _round_up(in_dim, 128)    # full-width MXU contraction passes
    n_pad = _round_up(out_dim, 128)   # lane-dense output -> unmasked stores

    # Pre-transpose + pad W once: (out_dim, in_dim) -> (K_pad, N_pad). Bias stays f32.
    w_p = jnp.pad(weight, ((0, n_pad - out_dim), (0, k_pad - in_dim))).T
    b_p = jnp.pad(bias.astype(jnp.float32), (0, n_pad - out_dim)).reshape(1, n_pad)

    # ---- Tile sizing (bytes-driven) and batch padding ---------------------------------------
    x_itemsize = jnp.dtype(x.dtype).itemsize
    w_itemsize = jnp.dtype(w_p.dtype).itemsize
    o_itemsize = jnp.dtype(out_dtype).itemsize

    tn = n_pad
    for cand in (block_n, 256, 128):
        if cand <= n_pad and n_pad % cand == 0:
            tn = cand
            break

    tb = max(8, (target_x_tile_bytes // (k_pad * x_itemsize)) // 8 * 8)
    tb = min(tb, max_block_b, _round_up(B, 8))

    def vmem_needed(tb_):
        # Double-buffered x / out / W / bias tiles.
        return 2 * (tb_ * k_pad * x_itemsize
                    + tb_ * tn * o_itemsize
                    + k_pad * tn * w_itemsize
                    + tn * 4)

    # Keep the footprint well under every generation's scoped-VMEM ceiling (v7x: 64 MiB phys).
    while tb > 8 and vmem_needed(tb) > 24 * 1024 * 1024:
        tb = max(8, (tb // 2) // 8 * 8)
    # TODO(synk): if the resident (K_pad, TN) weight tile itself outgrows VMEM, add a
    # K-reduction grid axis ("arbitrary") with an f32 accumulator scratch (cheap on v7x's MRB).

    b_pad = _round_up(B, tb)
    pad_b, pad_k = b_pad - B, k_pad - in_dim
    x_p = jnp.pad(x, ((0, pad_b), (0, pad_k))) if (pad_b or pad_k) else x

    grid = (n_pad // tn, b_pad // tb)   # out_dim blocks outer, batch blocks inner
    vmem_limit = max(vmem_needed(tb) + (4 << 20), 16 << 20)

    if core_parallel:
        dim_sems = (pltpu.PARALLEL, pltpu.CORE_PARALLEL)   # v7x: split batch across both TCs
    else:
        dim_sems = ("parallel", "parallel")

    x_spec_kwargs = {}
    if x_buffers > 2:
        x_spec_kwargs["pipeline_mode"] = pl.Buffered(x_buffers)  # deepen pipelining on tiny tiles

    out = pl.pallas_call(
        _linear_kernel,
        out_shape=jax.ShapeDtypeStruct((b_pad, n_pad), out_dtype),
        grid=grid,
        in_specs=[
            pl.BlockSpec((tb, k_pad), lambda j, i: (i, 0), **x_spec_kwargs),  # x: streamed per batch tile
            pl.BlockSpec((k_pad, tn), lambda j, i: (0, j)),                   # W: resident per N tile
            pl.BlockSpec((1, tn), lambda j, i: (0, j)),                       # bias: resident per N tile
        ],
        out_specs=pl.BlockSpec((tb, tn), lambda j, i: (i, j)),
        compiler_params=pltpu.CompilerParams(
            dimension_semantics=dim_sems,
            vmem_limit_bytes=vmem_limit,
        ),
    )(x_p, w_p, b_p)

    return out[:B, :out_dim]


if __name__ == "__main__":
    key = jax.random.PRNGKey(0)
    kx, kw, kb, kx2, kw2, kb2 = jax.random.split(key, 6)

    # --- Small demo shape consistent with the module: in_dim=32, out_dim=16, batch=8 ---------
    batch, in_dim, out_dim = 8, 32, 16
    bound = 1.0 / jnp.sqrt(jnp.float32(in_dim))
    weight = jax.random.uniform(kw, (out_dim, in_dim), jnp.float32, -bound, bound)
    bias = jax.random.uniform(kb, (out_dim,), jnp.float32, -bound, bound)
    x = jax.random.normal(kx, (batch, in_dim), jnp.float32)

    out = logistic_regression_forward(x, weight, bias, force_pallas=True)
    out = jax.block_until_ready(out)
    ref = x @ weight.T + bias
    assert out.shape == (batch, out_dim)
    assert jnp.allclose(out, ref, atol=1e-5, rtol=1e-5)

    # --- Larger shape that takes the Pallas path naturally (exercises batch + lane tiling) ---
    B2, K2, N2 = 4096, 256, 200
    bound2 = 1.0 / jnp.sqrt(jnp.float32(K2))
    weight2 = jax.random.uniform(kw2, (N2, K2), jnp.float32, -bound2, bound2)
    bias2 = jax.random.uniform(kb2, (N2,), jnp.float32, -bound2, bound2)
    x2 = jax.random.normal(kx2, (B2, K2), jnp.float32)

    out2 = logistic_regression_forward(x2, weight2, bias2)
    out2 = jax.block_until_ready(out2)
    ref2 = jnp.dot(x2, weight2.T, precision=jax.lax.Precision.HIGHEST) + bias2
    assert out2.shape == (B2, N2)
    assert jnp.allclose(out2, ref2, atol=1e-3, rtol=1e-3)

    print("KERNEL_OK")
</pallas_src>

<mosaic_0001>
module attributes {stable_mosaic.version = 11 : i64} {
  func.func @_linear_kernel(%arg0: i32, %arg1: i32, %arg2: memref<8x128xf32, #tpu.memory_space<vmem>>, %arg3: memref<128x128xf32, #tpu.memory_space<vmem>>, %arg4: memref<1x128xf32, #tpu.memory_space<vmem>>, %arg5: memref<8x128xf32, #tpu.memory_space<vmem>>) attributes {dimension_semantics = [#tpu.dimension_semantics<parallel>, #tpu.dimension_semantics<parallel>], iteration_bounds = array<i64: 1, 1>, scalar_prefetch = 0 : i64, scratch_operands = 0 : i64, tpu.core_type = #tpu.core_type<tc>, window_params = [{transform_indices = @transform_0, window_bounds = array<i64: 8, 128>}, {transform_indices = @transform_1, window_bounds = array<i64: 128, 128>}, {transform_indices = @transform_2, window_bounds = array<i64: 1, 128>}, {transform_indices = @transform_3, window_bounds = array<i64: 8, 128>}]} {
    %c0 = arith.constant 0 : index
    %c0_0 = arith.constant 0 : index
    %0 = vector.load %arg2[%c0, %c0_0] : memref<8x128xf32, #tpu.memory_space<vmem>>, vector<8x128xf32>
    %c0_1 = arith.constant 0 : index
    %c0_2 = arith.constant 0 : index
    %1 = vector.load %arg3[%c0_1, %c0_2] : memref<128x128xf32, #tpu.memory_space<vmem>>, vector<128x128xf32>
    %cst = arith.constant dense<0.000000e+00> : vector<8x128xf32>
    %2 = tpu.matmul %0, %1, %cst {dimension_numbers = #tpu.dot_dimension_numbers<[1], [0], [0], [1], [0, 0, 1, 1], [], []>} : vector<8x128xf32>, vector<128x128xf32>, vector<8x128xf32> -> vector<8x128xf32>
    %c0_3 = arith.constant 0 : index
    %c0_4 = arith.constant 0 : index
    %3 = vector.load %arg4[%c0_3, %c0_4] : memref<1x128xf32, #tpu.memory_space<vmem>>, vector<1x128xf32>
    %4 = vector.broadcast %3 : vector<1x128xf32> to vector<8x128xf32>
    %5 = arith.addf %2, %4 : vector<8x128xf32>
    %c0_5 = arith.constant 0 : index
    %c0_6 = arith.constant 0 : index
    %6 = vector.load %arg5[%c0_5, %c0_6] : memref<8x128xf32, #tpu.memory_space<vmem>>, vector<8x128xf32>
    tpu.vector_store %arg5[%c0_5, %c0_6], %5 {strides = array<i32>} : memref<8x128xf32, #tpu.memory_space<vmem>>, vector<8x128xf32>,
    return
  }
  func.func @transform_0(%arg0: i32, %arg1: i32) -> (i32, i32) {
    %c0_i32 = arith.constant 0 : i32
    %c0_i32_0 = arith.constant 0 : i32
    return %arg1, %c0_i32 : i32, i32
  }
  func.func @transform_1(%arg0: i32, %arg1: i32) -> (i32, i32) {
    %c0_i32 = arith.constant 0 : i32
    %c0_i32_0 = arith.constant 0 : i32
    return %c0_i32, %arg0 : i32, i32
  }
  func.func @transform_2(%arg0: i32, %arg1: i32) -> (i32, i32) {
    %c0_i32 = arith.constant 0 : i32
    %c0_i32_0 = arith.constant 0 : i32
    return %c0_i32, %arg0 : i32, i32
  }
  func.func @transform_3(%arg0: i32, %arg1: i32) -> (i32, i32) {
    %c0_i32 = arith.constant 0 : i32
    return %arg1, %arg0 : i32, i32
  }
}

</mosaic_0001>

<bundles_post_ra>
// kernel: tpu_custom_call.1
= control target key start
LH: loop header
LB: loop body
LE: loop exit
PB: predicated region body
PF: predicated region fallthrough
CT: control target
= control target key end

     0   :  { %8 = vsyncpa [#allocation3], 0  ;;  %s317_s0 = inlined_call_operand.hbm [shape: f32[8,128], index: 0, kind: input, shape index: {}]   ;;  %s318_s1 = inlined_call_operand.hbm [shape: f32[128,128], index: 1, kind: input, shape index: {}]   ;;  %s319_s2 = inlined_call_operand.vmem [shape: f32[1,128], index: 2, kind: input, shape index: {}]   ;;  %s320_s3 = inlined_call_operand.hbm [shape: f32[8,128], index: 3, kind: output, shape index: {}]  }
   0x1   :  { %9 = vsyncpa [#allocation6], 0 }
   0x2   :  { %10 = vsyncpa [#allocation4], 0  ;;  %s278_s12 = smov [#allocation2]   ;;  %s279_s14 = smov [#allocation5]  }
   0x3   :  { %s17_s13 = sshll.u32 %s278_s12, 4  ;;  %s26_s15 = sshll.u32 %s279_s14, 4  ;;  %s18_s13 = int_to_ptr.vmem [resolvable:$true] %s17_s13  ;;  %s27_s15 = int_to_ptr.vmem [resolvable:$true] %s26_s15 }
   0x4   :  { %s220_s16 = scalar_lea.vmem %s18_s13, 128  ;;  %p225_p1 = scmp.lt.s32.totalorder %s18_s13, %s18_s13 }
   0x5   :  { %p221_p0 = scmp.ne.s32.totalorder %s18_s13, %s220_s16  ;;  %p226_p2 = scmp.lt.s32.totalorder %s220_s16, %s220_s16 }
   0x7   :  { %p227_p3 = por %p226_p2, %p225_p1 }
   0x9   :  { %p228_p4 = pnand %p227_p3, %p221_p0 }
   0xb   :  { %231 = shalt.err (!%p228_p4)
}
   0xc   :  { %20 = dma.hbm_to_vmem [thread:$0]  %s317_s0, 128, %s18_s13, [#allocation3]  }
   0xd   :  { %s240_s19 = scalar_lea.vmem %s27_s15, 2048  ;;  %p245_p6 = scmp.lt.s32.totalorder %s27_s15, %s27_s15 }
   0xe   :  { %p241_p5 = scmp.ne.s32.totalorder %s27_s15, %s240_s19  ;;  %p246_p7 = scmp.lt.s32.totalorder %s240_s19, %s240_s19 }
  0x10   :  { %p247_p8 = por %p246_p7, %p245_p6 }
  0x12   :  { %p248_p9 = pnand %p247_p8, %p241_p5 }
  0x14   :  { %251 = shalt.err (!%p248_p9)
}
  0x15   :  { %s280_s20 = smov 128   ;;  %s281_s21 = smov 8  }
  0x16   :  { %32 = dma.hbm_to_vmem [thread:$0]  %s318_s1, 2048, %s27_s15, [#allocation6], %s280_s20, %s280_s20, %s281_s21  }
  0x17   :  { %272 = dma.done.wait [#allocation3], 128  }
  0x18   :  { %273 = vsyncadd [#allocation3], 4294967168 }
  0x19   :  { %274 = dma.done.wait [#allocation6], 2048  }
  0x1a   :  { %275 = vsyncadd [#allocation6], 4294965248  ;;  %v282_v0 = vmov 0.0   ;;  %vm283_vm0 = vmmov 0   ;;  %v57_v1 = vld [vmem:[#allocation5 + $0x78] sm:$0xff]  ;;  %v56_v2 = vld [vmem:[#allocation5 + $0x70] sm:$0xff] }
  0x1b   :  { %170 = vmatprep.subr.mxu0 %v282_v0  ;;  %202 = vmatprep.mubr.msk.f32.mxu0 %vm283_vm0, %v282_v0  ;;  %v55_v3 = vld [vmem:[#allocation5 + $0x68] sm:$0xff]  ;;  %v54_v4 = vld [vmem:[#allocation5 + $0x60] sm:$0xff]  ;;  %v53_v5 = vld [vmem:[#allocation5 + $0x58] sm:$0xff]  ;;  %s284_s24 = smov [#allocation7]  }
  0x1c   :  { %171 = vmatpush3.msra.mxu0 %v57_v1  ;;  %v52_v6 = vld [vmem:[#allocation5 + $0x50] sm:$0xff]  ;;  %v51_v7 = vld [vmem:[#allocation5 + $0x48] sm:$0xff]  ;;  %v50_v8 = vld [vmem:[#allocation5 + $0x40] sm:$0xff]  ;;  %s142_s25 = sshll.u32 %s284_s24, 4  ;;  %s143_s25 = int_to_ptr.vmem [resolvable:$true] %s142_s25 }
  0x1d   :  { %172 = vmatprep.subr.mxu0 %v282_v0  ;;  %v49_v9 = vld [vmem:[#allocation5 + $0x38] sm:$0xff]  ;;  %v48_v10 = vld [vmem:[#allocation5 + $0x30] sm:$0xff]  ;;  %v47_v11 = vld [vmem:[#allocation5 + $0x28] sm:$0xff]  ;;  %s252_s26 = scalar_lea.vmem %s143_s25, 128  ;;  %p257_p11 = scmp.lt.s32.totalorder %s143_s25, %s143_s25 }
  0x1e   :  { %173 = vmatpush3.msra.mxu0 %v56_v2  ;;  %v46_v12 = vld [vmem:[#allocation5 + $0x20] sm:$0xff]  ;;  %v45_v13 = vld [vmem:[#allocation5 + $0x18] sm:$0xff]  ;;  %v44_v14 = vld [vmem:[#allocation5 + $0x10] sm:$0xff]  ;;  %p253_p10 = scmp.ne.s32.totalorder %s143_s25, %s252_s26  ;;  %p258_p12 = scmp.lt.s32.totalorder %s252_s26, %s252_s26 }
  0x1f   :  { %174 = vmatprep.subr.mxu0 %v282_v0  ;;  %v43_v15 = vld [vmem:[#allocation5 + $0x8] sm:$0xff]  ;;  %v42_v16 = vld [vmem:[#allocation5] sm:$0xff]  ;;  %v41_v17 = vld [vmem:[#allocation2] sm:$0xff] }
  0x20   :  { %175 = vmatpush3.msra.mxu0 %v55_v3  ;;  %v152_v18 = vld [vmem:[%s319_s2] ss:$0 sm:$0xff]  ;;  %p259_p13 = por %p258_p12, %p257_p11 }
  0x21   :  { %176 = vmatprep.subr.mxu0 %v282_v0 }
  0x22   :  { %177 = vmatpush3.msra.mxu0 %v54_v4  ;;  %p260_p0 = pnand %p259_p13, %p253_p10 }
  0x23   :  { %178 = vmatprep.subr.mxu0 %v282_v0 }
  0x24   :  { %179 = vmatpush3.msra.mxu0 %v53_v5 }
  0x25   :  { %180 = vmatprep.subr.mxu0 %v282_v0 }
  0x26   :  { %181 = vmatpush3.msra.mxu0 %v52_v6 }
  0x27   :  { %182 = vmatprep.subr.mxu0 %v282_v0 }
  0x28   :  { %183 = vmatpush3.msra.mxu0 %v51_v7 }
  0x29   :  { %184 = vmatprep.subr.mxu0 %v282_v0 }
  0x2a   :  { %185 = vmatpush3.msra.mxu0 %v50_v8 }
  0x2b   :  { %186 = vmatprep.subr.mxu0 %v282_v0 }
  0x2c   :  { %187 = vmatpush3.msra.mxu0 %v49_v9 }
  0x2d   :  { %188 = vmatprep.subr.mxu0 %v282_v0 }
  0x2e   :  { %189 = vmatpush3.msra.mxu0 %v48_v10 }
  0x2f   :  { %190 = vmatprep.subr.mxu0 %v282_v0 }
  0x30   :  { %191 = vmatpush3.msra.mxu0 %v47_v11 }
  0x31   :  { %192 = vmatprep.subr.mxu0 %v282_v0 }
  0x32   :  { %193 = vmatpush3.msra.mxu0 %v46_v12 }
  0x33   :  { %194 = vmatprep.subr.mxu0 %v282_v0 }
  0x34   :  { %195 = vmatpush3.msra.mxu0 %v45_v13 }
  0x35   :  { %196 = vmatprep.subr.mxu0 %v282_v0 }
  0x36   :  { %197 = vmatpush3.msra.mxu0 %v44_v14 }
  0x37   :  { %198 = vmatprep.subr.mxu0 %v282_v0 }
  0x38   :  { %199 = vmatpush3.msra.mxu0 %v43_v15 }
  0x39   :  { %200 = vmatprep.subr.mxu0 %v282_v0 }
  0x3a   :  { %201 = vmatpush3.msra.mxu0 %v42_v16 }
  0x3b   :  { %203 = vmatmul.mubr.f32.vlgmr.msra.gmra.mxu0 %v41_v17 }
  0xfb   :  { %v131_v19 = vpop.f32.mrf.mxu0 }
  0xfc   :  { %v132_v20 = vadd.f32 %v152_v18, %v131_v19 }
  0xfd   :  { %v204_v21 = vpop.f32.mrf.mxu0 }
  0xfe   :  { %135 = vst [vmem:[#allocation7] sm:$0xff] %v132_v20 }
  0xff   :  { %263 = shalt.err (!%p260_p0)
}
 0x100   :  { %145 = dma.vmem_to_hbm [thread:$0]  %s143_s25, 128, %s320_s3, [#allocation4]  }
 0x101   :  { %276 = dma.done.wait [#allocation4], 128  }
 0x102   :  { %277 = vsyncadd [#allocation4], 4294967168 }
 0x103   :  { %149 = vsyncpa [#allocation3], 1 }
 0x104   :  { %150 = vsyncpa [#allocation6], 1 }
 0x105   :  { %151 = vsyncpa [#allocation4], 1 }

</bundles_post_ra>
